<compile_context>
chip_gen: v6e
topology: v6e:2x2x1
jax: 0.10.0
libtpu: 0.0.40
codegen_flags: <defaults>
</compile_context>

<pallas_src>
import math
import functools

import jax
import jax.numpy as jnp
from jax.experimental import pallas as pl
from jax.experimental.pallas import tpu as pltpu


def _round_up(x, m):
    return (x + m - 1) // m * m


def _pad2(x, rows, cols):
    r, c = x.shape
    return jnp.pad(x, ((0, rows - r), (0, cols - c)))


def _matmul_epilogue_kernel(*refs, has_bias, activation, num_valid_cols):
    """out[i] = act( sum_k A[i,k] @ B[k,:] (+ bias) ).

    grid = (row tiles i [parallel], reduction tiles k [arbitrary]).
    acc_ref is an f32 VMEM accumulator resident across the k axis."""
    if has_bias:
        a_ref, b_ref, bias_ref, out_ref, acc_ref = refs
    else:
        a_ref, b_ref, out_ref, acc_ref = refs
        bias_ref = None
    k = pl.program_id(1)

    @pl.when(k == 0)
    def _():
        acc_ref[...] = jnp.zeros_like(acc_ref)

    # bf16 x bf16 -> f32 on the MXU.
    acc_ref[...] += jnp.dot(a_ref[...], b_ref[...],
                            preferred_element_type=jnp.float32)

    @pl.when(k == pl.num_programs(1) - 1)
    def _():
        h = acc_ref[...]                                   # f32 epilogue
        if has_bias:
            h = h + bias_ref[...]
        if activation == "relu":
            h = jnp.maximum(h, 0.0)
        elif activation == "log_softmax":
            # Mask lane-padding class columns out of the softmax sum.
            if num_valid_cols is not None and num_valid_cols < h.shape[1]:
                col = jax.lax.broadcasted_iota(jnp.int32, h.shape, 1)
                h = jnp.where(col < num_valid_cols, h, -1e30)
            m = jnp.max(h, axis=1, keepdims=True)
            z = h - m
            h = z - jnp.log(jnp.sum(jnp.exp(z), axis=1, keepdims=True))
        out_ref[...] = h.astype(out_ref.dtype)


def _matmul(a, b, bias=None, *, activation=None, out_dtype,
            num_valid_cols=None, tm=128, tk=128):
    """Tiled matmul with fused bias/activation epilogue.
    a: [Mp, Kp] bf16, b: [Kp, Np] bf16, bias: [1, Np] f32 or None."""
    m_pad, k_pad = a.shape
    n_pad = b.shape[1]
    assert m_pad % tm == 0 and k_pad % tk == 0
    grid = (m_pad // tm, k_pad // tk)
    has_bias = bias is not None

    kernel = functools.partial(_matmul_epilogue_kernel, has_bias=has_bias,
                               activation=activation,
                               num_valid_cols=num_valid_cols)

    in_specs = [
        pl.BlockSpec((tm, tk), lambda i, k: (i, k)),      # A tile
        pl.BlockSpec((tk, n_pad), lambda i, k: (k, 0)),   # B k-slab (lane-dense)
    ]
    args = [a, b]
    if has_bias:
        in_specs.append(pl.BlockSpec((1, n_pad), lambda i, k: (0, 0)))
        args.append(bias)

    # Advisory cost estimate.
    flops = 2 * m_pad * k_pad * n_pad
    transcendentals = m_pad * n_pad if activation == "log_softmax" else 0
    bytes_accessed = (a.size * a.dtype.itemsize
                      + grid[0] * b.size * b.dtype.itemsize
                      + (bias.size * bias.dtype.itemsize if has_bias else 0)
                      + m_pad * n_pad * jnp.dtype(out_dtype).itemsize)

    return pl.pallas_call(
        kernel,
        out_shape=jax.ShapeDtypeStruct((m_pad, n_pad), out_dtype),
        grid_spec=pltpu.PrefetchScalarGridSpec(
            num_scalar_prefetch=0,
            grid=grid,
            in_specs=in_specs,
            out_specs=pl.BlockSpec((tm, n_pad), lambda i, k: (i, 0)),
            scratch_shapes=[pltpu.VMEM((tm, n_pad), jnp.float32)],
        ),
        compiler_params=pltpu.CompilerParams(
            dimension_semantics=("parallel", "arbitrary")),
        cost_estimate=pl.CostEstimate(flops=flops,
                                      transcendentals=transcendentals,
                                      bytes_accessed=bytes_accessed),
    )(*args)


def _graphconv_layer(x, adj, w, b, *, activation, out_dtype,
                     num_valid_cols=None, tm=128, tk=128):
    """One GraphConv layer: act(adj @ (x @ W) + b).
    x: [Np, Fp] bf16, adj: [Np, Np] bf16, w: [Fp, Hp] bf16, b: [1, Hp] f32."""
    # (1) feature transform -- computed exactly once per layer.
    support = _matmul(x, w, None, activation=None, out_dtype=jnp.bfloat16,
                      tm=tm, tk=tk)
    # (2) neighborhood aggregation + bias + activation, fused epilogue.
    return _matmul(adj, support, b, activation=activation, out_dtype=out_dtype,
                   num_valid_cols=num_valid_cols, tm=tm, tk=tk)


def gcn_forward(feat, adj, params, *, tm=128, tk=128):
    """3-layer GCN forward (inference).  Operands are cast to bf16 at the
    pallas_call boundary; accumulation and the epilogues stay f32."""
    w1, b1, w2, b2, w3, b3 = params
    n, f = feat.shape
    num_class = w3.shape[1]

    n_pad = _round_up(n, max(tm, tk))
    f_pad = _round_up(f, 128)
    h1_pad = _round_up(w1.shape[1], 128)
    h2_pad = _round_up(w2.shape[1], 128)
    c_pad = _round_up(num_class, 128)

    x = _pad2(feat, n_pad, f_pad).astype(jnp.bfloat16)
    a = _pad2(adj, n_pad, n_pad).astype(jnp.bfloat16)
    w1p = _pad2(w1, f_pad, h1_pad).astype(jnp.bfloat16)
    w2p = _pad2(w2, h1_pad, h2_pad).astype(jnp.bfloat16)
    w3p = _pad2(w3, h2_pad, c_pad).astype(jnp.bfloat16)
    b1p = _pad2(b1, 1, h1_pad).astype(jnp.float32)
    b2p = _pad2(b2, 1, h2_pad).astype(jnp.float32)
    b3p = _pad2(b3, 1, c_pad).astype(jnp.float32)

    # TODO(synk): dropout omitted (inference-mode identity).
    h = _graphconv_layer(x, a, w1p, b1p, activation="relu",
                         out_dtype=jnp.bfloat16, tm=tm, tk=tk)
    h = _graphconv_layer(h, a, w2p, b2p, activation="relu",
                         out_dtype=jnp.bfloat16, tm=tm, tk=tk)
    z = _graphconv_layer(h, a, w3p, b3p, activation="log_softmax",
                         out_dtype=jnp.float32, num_valid_cols=num_class,
                         tm=tm, tk=tk)
    return z[:n, :num_class]


def init_graphconv(key, in_features, out_features):
    """Matches GraphConv.reset_parameters: U(-stdv, stdv), stdv = 1/sqrt(out)."""
    stdv = 1.0 / math.sqrt(out_features)
    kw, kb = jax.random.split(key)
    w = jax.random.uniform(kw, (in_features, out_features),
                           minval=-stdv, maxval=stdv, dtype=jnp.float32)
    b = jax.random.uniform(kb, (1, out_features),
                           minval=-stdv, maxval=stdv, dtype=jnp.float32)
    return w, b


def gcn_reference(feat, adj, params):
    """Plain-JAX f32 reference for a correctness check."""
    w1, b1, w2, b2, w3, b3 = params
    h = jax.nn.relu(adj @ (feat @ w1) + b1)
    h = jax.nn.relu(adj @ (h @ w2) + b2)
    z = adj @ (h @ w3) + b3
    return jax.nn.log_softmax(z, axis=1)


if __name__ == "__main__":
    # Small, module-consistent shapes; N=200 pads to 256 -> 2x2 grid for the
    # aggregation matmuls, single-k-tile grid for the feature transforms.
    N = 200
    NUM_FEAT = 64
    NUM_HIDDEN1 = 48
    NUM_HIDDEN2 = 32
    NUM_CLASS = 7

    key = jax.random.PRNGKey(0)
    k_feat, k_adj, k1, k2, k3 = jax.random.split(key, 5)

    feat = jax.random.normal(k_feat, (N, NUM_FEAT), dtype=jnp.float32)

    # Synthetic row-normalized adjacency (self-loops + random edges).
    a = (jax.random.uniform(k_adj, (N, N)) > 0.9).astype(jnp.float32)
    a = jnp.minimum(a + a.T + jnp.eye(N, dtype=jnp.float32), 1.0)
    adj = a / jnp.sum(a, axis=1, keepdims=True)

    w1, b1 = init_graphconv(k1, NUM_FEAT, NUM_HIDDEN1)
    w2, b2 = init_graphconv(k2, NUM_HIDDEN1, NUM_HIDDEN2)
    w3, b3 = init_graphconv(k3, NUM_HIDDEN2, NUM_CLASS)
    params = (w1, b1, w2, b2, w3, b3)

    out = gcn_forward(feat, adj, params)
    out = jax.block_until_ready(out)

    ref = gcn_reference(feat, adj, params)
    assert out.shape == (N, NUM_CLASS)
    max_err = float(jnp.max(jnp.abs(out - ref)))
    # bf16 operands -> loosened tolerance vs the f32 reference.
    assert max_err < 5e-2, f"mismatch vs reference (max abs err {max_err})"

    print("KERNEL_OK")
</pallas_src>

<mosaic_0001>
module attributes {stable_mosaic.version = 11 : i64} {
  func.func @_matmul_epilogue_kernel(%arg0: i32, %arg1: i32, %arg2: memref<128x128xbf16, #tpu.memory_space<vmem>>, %arg3: memref<128x128xbf16, #tpu.memory_space<vmem>>, %arg4: memref<128x128xbf16, #tpu.memory_space<vmem>>, %arg5: memref<128x128xf32, #tpu.memory_space<vmem>>) attributes {dimension_semantics = [#tpu.dimension_semantics<parallel>, #tpu.dimension_semantics<arbitrary>], iteration_bounds = array<i64: 2, 1>, scalar_prefetch = 0 : i64, scratch_operands = 1 : i64, tpu.core_type = #tpu.core_type<tc>, window_params = [{transform_indices = @transform_0, window_bounds = array<i64: 128, 128>}, {transform_indices = @transform_1, window_bounds = array<i64: 128, 128>}, {transform_indices = @transform_2, window_bounds = array<i64: 128, 128>}]} {
    %c0_i32 = arith.constant 0 : i32
    %0 = arith.cmpi eq, %arg1, %c0_i32 : i32
    %1 = arith.extui %0 : i1 to i32
    %c0_i32_0 = arith.constant 0 : i32
    %2 = arith.cmpi ne, %1, %c0_i32_0 : i32
    scf.if %2 {
      %cst_10 = arith.constant 0.000000e+00 : f32
      %12 = vector.broadcast %cst_10 : f32 to vector<128x128xf32>
      %c0_11 = arith.constant 0 : index
      %c0_12 = arith.constant 0 : index
      %13 = vector.load %arg5[%c0_11, %c0_12] : memref<128x128xf32, #tpu.memory_space<vmem>>, vector<128x128xf32>
      tpu.vector_store %arg5[%c0_11, %c0_12], %12 {strides = array<i32>} : memref<128x128xf32, #tpu.memory_space<vmem>>, vector<128x128xf32>,
    } else {
    }
    %c0 = arith.constant 0 : index
    %c0_1 = arith.constant 0 : index
    %3 = vector.load %arg5[%c0, %c0_1] : memref<128x128xf32, #tpu.memory_space<vmem>>, vector<128x128xf32>
    %c0_2 = arith.constant 0 : index
    %c0_3 = arith.constant 0 : index
    %4 = vector.load %arg2[%c0_2, %c0_3] : memref<128x128xbf16, #tpu.memory_space<vmem>>, vector<128x128xbf16>
    %c0_4 = arith.constant 0 : index
    %c0_5 = arith.constant 0 : index
    %5 = vector.load %arg3[%c0_4, %c0_5] : memref<128x128xbf16, #tpu.memory_space<vmem>>, vector<128x128xbf16>
    %cst = arith.constant dense<0.000000e+00> : vector<128x128xf32>
    %6 = tpu.matmul %4, %5, %cst {dimension_numbers = #tpu.dot_dimension_numbers<[1], [0], [0], [1], [0, 0, 1, 1], [], []>} : vector<128x128xbf16>, vector<128x128xbf16>, vector<128x128xf32> -> vector<128x128xf32>
    %7 = arith.addf %3, %6 : vector<128x128xf32>
    %c0_6 = arith.constant 0 : index
    %c0_7 = arith.constant 0 : index
    %8 = vector.load %arg5[%c0_6, %c0_7] : memref<128x128xf32, #tpu.memory_space<vmem>>, vector<128x128xf32>
    tpu.vector_store %arg5[%c0_6, %c0_7], %7 {strides = array<i32>} : memref<128x128xf32, #tpu.memory_space<vmem>>, vector<128x128xf32>,
    %c0_i32_8 = arith.constant 0 : i32
    %9 = arith.cmpi eq, %arg1, %c0_i32_8 : i32
    %10 = arith.extui %9 : i1 to i32
    %c0_i32_9 = arith.constant 0 : i32
    %11 = arith.cmpi ne, %10, %c0_i32_9 : i32
    scf.if %11 {
      %c0_10 = arith.constant 0 : index
      %c0_11 = arith.constant 0 : index
      %12 = vector.load %arg5[%c0_10, %c0_11] : memref<128x128xf32, #tpu.memory_space<vmem>>, vector<128x128xf32>
      %13 = arith.truncf %12 : vector<128x128xf32> to vector<128x128xbf16>
      %c0_12 = arith.constant 0 : index
      %c0_13 = arith.constant 0 : index
      %14 = vector.load %arg4[%c0_12, %c0_13] : memref<128x128xbf16, #tpu.memory_space<vmem>>, vector<128x128xbf16>
      tpu.vector_store %arg4[%c0_12, %c0_13], %13 {strides = array<i32>} : memref<128x128xbf16, #tpu.memory_space<vmem>>, vector<128x128xbf16>,
    } else {
    }
    return
  }
  func.func @transform_0(%arg0: i32, %arg1: i32) -> (i32, i32) {
    %c0_i32 = arith.constant 0 : i32
    return %arg0, %arg1 : i32, i32
  }
  func.func @transform_1(%arg0: i32, %arg1: i32) -> (i32, i32) {
    %c0_i32 = arith.constant 0 : i32
    %c0_i32_0 = arith.constant 0 : i32
    return %arg1, %c0_i32 : i32, i32
  }
  func.func @transform_2(%arg0: i32, %arg1: i32) -> (i32, i32) {
    %c0_i32 = arith.constant 0 : i32
    %c0_i32_0 = arith.constant 0 : i32
    return %arg0, %c0_i32 : i32, i32
  }
}

</mosaic_0001>

<bundles_post_ra>
// kernel: tpu_custom_call.1
= control target key start
LH: loop header
LB: loop body
LE: loop exit
PB: predicated region body
PF: predicated region fallthrough
CT: control target
= control target key end

     0   :  { %7 = vsyncpa [#allocation4], 0  ;;  %s1339_s0 = inlined_call_operand.hbm [shape: bf16[256,128], index: 0, kind: input, shape index: {}]   ;;  %s1340_s1 = inlined_call_operand.hbm [shape: bf16[128,128], index: 1, kind: input, shape index: {}]   ;;  %s1341_s2 = inlined_call_operand.hbm [shape: bf16[256,128], index: 2, kind: output, shape index: {}]  }
   0x1   :  { %9 = vsyncpa [#allocation4 + $0x1], 0 }
   0x2   :  { %10 = vsyncpa [#allocation7], 0 }
   0x3   :  { %11 = vsyncpa [#allocation5], 0 }
   0x4   :  { %13 = vsyncpa [#allocation5 + $0x1], 0  ;;  %s1138_s9 = smov 0   ;;  %s1140_s10 = smov 0  }
   0x5   :  { %s1142_s11 = smov 0   ;;  %s1144_s12 = smov 0  }
   0x6   :  { %s1146_s13 = smov 0   ;;  %s1148_s14 = smov 0  }
   0x7 LB: > { %s705_s15 = sadd.s32 4294967295, %s1114_s14   ;;  %s706_s16 = sadd.s32 4294967294, %s1114_s14   ;;  %s1114_s14 = sphi %s1148_s14, %s19_s14   ;;  %s1110_s13 = sphi %s1146_s13, %s1361_s13   ;;  %s1106_s12 = sphi %s1144_s12, %s1360_s12   ;;  %s1102_s11 = sphi %s1142_s11, %s1359_s11   ;;  %s1098_s10 = sphi %s1140_s10, %s1358_s10   ;;  %s1094_s9 = sphi %s1138_s9, %s1357_s9  }
   0x8   : > { %p53_p0 = scmp.ne.s32.totalorder %s1098_s10, %s1094_s9  ;;  %p1172_p1 = scmp.eq.s32.totalorder %s705_s15, 0 }
   0x9   : > { %p1176_p2 = scmp.eq.s32.totalorder %s705_s15, 1  ;;  %p109_p3 = scmp.eq.s32.totalorder %s706_s16, 1 }
   0xa   : > { %p1182_p4 = por %p1172_p1, %p53_p0  ;;  %p707_p5 = scmp.ge.s32.totalorder %s1114_s14, 1 }
   0xb   : > { %p1187_p6 = por %p109_p3, %p53_p0  ;;  %p116_p7 = scmp.lt.s32.totalorder %s1114_s14, 3 }
   0xc   : > { %s1346_s19 = scalar_select %p1182_p4, 1, 0 }
   0xd   : > { %s1347_s20 = scalar_select %p1187_p6, 1, 0 }
   0xe   : > { %p1192_p8 = pnand %p707_p5, %p116_p7  ;;  %s1116_s22 = smov [#allocation6]  }
   0xf   : > { %s131_s23 = sshll.u32 %s1116_s22, 4  ;;  %s31_s25 = sadd.s32 1, %s1110_s13  ;;  %s132_s23 = int_to_ptr.vmem [resolvable:$true] %s131_s23 }
  0x10   : > { %p891_p9 = pneg %p1192_p8  ;;  %s987_s26 = scalar_lea.vmem %s132_s23, 1024 }
  0x11   : > { %p988_p13 = scmp.ne.s32.totalorder %s132_s23, %s987_s26  ;;  %p995_p5 = scmp.lt.s32.totalorder %s132_s23, %s132_s23 }
  0x12   : > { %p1201_p11 = pnand %p891_p9, %p1172_p1  ;;  %p996_p7 = scmp.lt.s32.totalorder %s987_s26, %s987_s26 }
  0x14   : > { %p978_p12 = pneg %p1201_p11  ;;  %p997_p6 = por %p996_p7, %p995_p5 }
  0x16   : > { %p990_p0 = pnand %p988_p13, %p978_p12 }
  0x18   : > { %p991_p3 = pneg %p990_p0 }
  0x1a   : > { %p998_p4 = pnand %p997_p6, %p991_p3 }
  0x1c   : > { %1001 = shalt.err (!%p998_p4)
}
  0x1d   : > { %s1343_s27 = smov 64   ;;  %s1118_s28 = smov 4  }
  0x1e   : > { %894 = dma.hbm_to_vmem [thread:$0]  (!%p1201_p11), %s1340_s1, 1024, %s132_s23, [#allocation7], %s1343_s27, %s1343_s27, %s1118_s28  }
  0x1f   : > { %p33_p4 = scmp.ge.s32.totalorder %s31_s25, 2  ;;  %s40_s3 = sadd.s32 1, %s1102_s11 }
  0x20   : > { %p47_p6 = scmp.ne.s32.totalorder %s1102_s11, %s1098_s10  ;;  %p48_p9 = scmp.eq.s32.totalorder %s1114_s14, 0 }
  0x21   : > { %s1363_s25 = smov (%p33_p4, %s31_s25), 0  ;;  %p904_p0 = scmp.lt.s32.totalorder %s1114_s14, 2 }
  0x22   : > { %p1222_p12 = por %p48_p9, %p47_p6  ;;  %p1228_p13 = por %p1176_p2, %p47_p6 }
  0x23   : > { %s35_s6 = ssub.s32 %s1110_s13, %s1363_s25  ;;  %s145_s7 = sand.u32 1, %s1102_s11  }
  0x24   : > { %p38_p11 = scmp.eq.s32.totalorder %s35_s6, 0  ;;  %s710_s8 = sshll.u32 %s145_s7, 6 }
  0x25   : > { %s754_s16 = sshll.u32 %s1110_s13, 10  ;;  %s149_s26 = scalar_lea.vmem [#allocation3], %s710_s8 }
  0x26   : > { %s1237_s15 = scalar_select %p38_p11, %s1102_s11, %s40_s3  }
  0x27   : > { %s156_s24 = scalar_lea.hbm %s1339_s0, %s754_s16  ;;  %s157_s29 = sshll.u32 %s149_s26, 4  ;;  %s158_s29 = int_to_ptr.vmem [resolvable:$true] %s157_s29 }
  0x28   : > { %p1245_p2 = pnand %p904_p0, %p1222_p12  ;;  %s146_s30 = scalar_lea.sflag [#allocation4], %s145_s7 }
  0x29   : > { %s1015_s6 = scalar_lea.vmem %s158_s29, 1024  ;;  %s1119_s3 = smov [#allocation3]  }
  0x2a   : > { %p1004_p3 = pneg %p1245_p2  ;;  %p1016_p5 = scmp.ne.s32.totalorder %s158_s29, %s1015_s6 }
  0x2b   : > { %s1020_s27 = sshll.u32 %s1119_s3, 4  ;;  %s1021_s27 = int_to_ptr.vmem [resolvable:$false] %s1020_s27 }
  0x2c   : > { %p1018_p7 = pnand %p1016_p5, %p1004_p3  ;;  %s1022_s16 = scalar_lea.vmem %s1021_s27, 2048 }
  0x2d   : > { %p1023_p6 = scmp.lt.s32.totalorder %s158_s29, %s1021_s27  ;;  %p1024_p9 = scmp.lt.s32.totalorder %s1022_s16, %s1015_s6 }
  0x2e   : > { %p1019_p4 = pneg %p1018_p7 }
  0x2f   : > { %p1025_p11 = por %p1024_p9, %p1023_p6 }
  0x31   : > { %p1026_p10 = pnand %p1025_p11, %p1019_p4 }
  0x33   : > { %1029 = shalt.err (!%p1026_p10)
}
  0x34   : > { %s1353_s4 = smov 64   ;;  %169 = sbr.rel (%p1192_p8) target bundleno = 316 (0x13c), region = 28 }
  0x35   : > { %898 = dma.hbm_to_vmem [thread:$0]  (!%p1245_p2), %s156_s24, 1024, %s158_s29, %s146_s30, %s1353_s4, %s1353_s4, %s1118_s28  }
  0x36   : > { %s1259_s7 = sand.u32 (!%p1192_p8), 1, %s1098_s10   ;;  %p1354_p10 = scmp.ne.s32.totalorder (!%p1192_p8), %s1346_s19, 0 }
  0x37   : > { %s714_s27 = sshll.u32 (!%p1192_p8), %s1259_s7, 6  ;;  %s172_s8 = scalar_lea.sflag (!%p1192_p8), [#allocation4], %s1259_s7 }
  0x38   : > { %s1265_s22 = scalar_lea.vmem (!%p1192_p8), [#allocation3], %s714_s27 }
  0x39   : > { %1081 = dma.done.wait (%p1354_p10), %s172_s8, 1024  }
  0x3a   : > { %1083 = vsyncadd (%p1354_p10), %s172_s8, 4294966272 }
  0x3b   : > { %1085 = dma.done.wait (%p1172_p1), [#allocation7], 1024  }
  0x3c   : > { %1087 = vsyncadd (%p1172_p1), [#allocation7], 4294966272  ;;  %v960_v0 = vld [vmem:[#allocation6 + $0x38] sm:$0xff]   ;;  %v961_v1 = vld [vmem:[#allocation6 + $0x30] sm:$0xff]   ;;  %s199_s17 = scalar_lea.vmem [#allocation8], %s714_s27  ;;  %s771_s21 = sshll.u32 %s1106_s12, 10 }
  0x3d   : > { %835 = vmatprep.subr.bf16.mxu0 %v960_v0  ;;  %867 = vmatprep.subr.bf16.mxu1 %v960_v0  ;;  %v962_v2 = vld [vmem:[#allocation6 + $0x28] sm:$0xff]   ;;  %v963_v3 = vld [vmem:[#allocation6 + $0x20] sm:$0xff]   ;;  %v964_v6 = vld [vmem:[#allocation6 + $0x18] sm:$0xff]   ;;  %s610_s19 = sshll.u32 %s199_s17, 4  ;;  %s1291_s24 = scalar_lea.hbm %s1341_s2, %s771_s21  ;;  %s1286_s19 = int_to_ptr.vmem [resolvable:$true] %s610_s19 }
  0x3e   : > { %836 = vmatpush3.bf16.msra.mxu0 %v960_v0  ;;  %875 = vmatpush3.bf16.msra.mxu1 %v960_v0  ;;  %v968_v4 = vld [vmem:[%s1265_s22] sm:$0xff]   ;;  %v965_v7 = vld [vmem:[#allocation6 + $0x10] sm:$0xff]   ;;  %v966_v8 = vld [vmem:[#allocation6 + $0x8] sm:$0xff]   ;;  %s597_s12 = scalar_lea.sflag [#allocation5], %s1259_s7  ;;  %s1030_s26 = scalar_lea.vmem %s1286_s19, 1024 }
  0x3f   : > { %837 = vmatprep.subr.bf16.mxu0 %v961_v1  ;;  %868 = vmatprep.subr.bf16.mxu1 %v961_v1  ;;  %v969_v5 = vld [vmem:[%s1265_s22 + $0x20] sm:$0xff]   ;;  %v970_v10 = vld [vmem:[%s1265_s22 + $0x8] sm:$0xff]   ;;  %v972_v12 = vld [vmem:[%s1265_s22 + $0x10] sm:$0xff]   ;;  %p1031_p1 = scmp.ne.s32.totalorder %s1286_s19, %s1030_s26  ;;  %s1120_s29 = smov [#allocation8]  }
  0x40   : > { %851 = vmatprep.mubr.bf16.mxu0 %v968_v4  ;;  %859 = vmatprep.mubr.bf16.mxu1 %v969_v5  ;;  %v967_v9 = vld [vmem:[#allocation6] sm:$0xff]   ;;  %v971_v11 = vld [vmem:[%s1265_s22 + $0x28] sm:$0xff]   ;;  %v973_v13 = vld [vmem:[%s1265_s22 + $0x30] sm:$0xff]   ;;  %s1034_s18 = sshll.u32 %s1120_s29, 4  ;;  %s1035_s18 = int_to_ptr.vmem [resolvable:$false] %s1034_s18 }
  0x41   : > { %v974_v14 = vld [vmem:[%s1265_s22 + $0x18] sm:$0xff]   ;;  %p1032_p8 = pnand %p1031_p1, %p1228_p13  ;;  %s1036_s30 = scalar_lea.vmem %s1035_s18, 2048 }
  0x42   : > { %838 = vmatpush3.bf16.msra.mxu0 %v961_v1  ;;  %876 = vmatpush3.bf16.msra.mxu1 %v961_v1  ;;  %v975_v15 = vld [vmem:[%s1265_s22 + $0x38] sm:$0xff]   ;;  %p1037_p0 = scmp.lt.s32.totalorder %s1286_s19, %s1035_s18  ;;  %p1038_p2 = scmp.lt.s32.totalorder %s1036_s30, %s1030_s26 }
  0x43   : > { %839 = vmatprep.subr.bf16.mxu0 %v962_v2  ;;  %869 = vmatprep.subr.bf16.mxu1 %v962_v2  ;;  %p1033_p12 = pneg %p1032_p8 }
  0x44   : > { %p1039_p3 = por %p1038_p2, %p1037_p0 }
  0x46   : > { %840 = vmatpush3.bf16.msra.mxu0 %v962_v2  ;;  %877 = vmatpush3.bf16.msra.mxu1 %v962_v2  ;;  %p1040_p5 = pnand %p1039_p3, %p1033_p12 }
  0x47   : > { %841 = vmatprep.subr.bf16.mxu0 %v963_v3  ;;  %870 = vmatprep.subr.bf16.mxu1 %v963_v3 }
  0x4a   : > { %842 = vmatpush3.bf16.msra.mxu0 %v963_v3  ;;  %878 = vmatpush3.bf16.msra.mxu1 %v963_v3 }
  0x4b   : > { %843 = vmatprep.subr.bf16.mxu0 %v964_v6  ;;  %871 = vmatprep.subr.bf16.mxu1 %v964_v6 }
  0x4e   : > { %844 = vmatpush3.bf16.msra.mxu0 %v964_v6  ;;  %879 = vmatpush3.bf16.msra.mxu1 %v964_v6 }
  0x4f   : > { %845 = vmatprep.subr.bf16.mxu0 %v965_v7  ;;  %872 = vmatprep.subr.bf16.mxu1 %v965_v7 }
  0x52   : > { %846 = vmatpush3.bf16.msra.mxu0 %v965_v7  ;;  %880 = vmatpush3.bf16.msra.mxu1 %v965_v7 }
  0x53   : > { %847 = vmatprep.subr.bf16.mxu0 %v966_v8  ;;  %873 = vmatprep.subr.bf16.mxu1 %v966_v8 }
  0x56   : > { %848 = vmatpush3.bf16.msra.mxu0 %v966_v8  ;;  %881 = vmatpush3.bf16.msra.mxu1 %v966_v8 }
  0x57   : > { %849 = vmatprep.subr.bf16.mxu0 %v967_v9  ;;  %874 = vmatprep.subr.bf16.mxu1 %v967_v9 }
  0x5a   : > { %850 = vmatpush3.bf16.msra.mxu0 %v967_v9  ;;  %882 = vmatpush3.bf16.msra.mxu1 %v967_v9 }
  0x5d   : > { %852 = vmatmul.mubr.bf16.vlgmr.msra.gmra.mxu0 %v970_v10  ;;  %860 = vmatmul.mubr.bf16.vlgmr.msra.gmra.mxu1 %v971_v11 }
  0x5e   : > { %855 = vmatprep.mubr.bf16.mxu0 %v972_v12  ;;  %863 = vmatprep.mubr.bf16.mxu1 %v973_v13 }
  0x65   : > { %856 = vmatmul.mubr.bf16.gmra.mxu0 %v974_v14  ;;  %864 = vmatmul.mubr.bf16.gmra.mxu1 %v975_v15 }
 0x11d   : > { %v853_v16 = vpop.f32.mrf.mxu0  ;;  %v861_v17 = vpop.f32.mrf.mxu1 }
 0x11f   : > { %v402_v18 = vpop.f32.mrf.mxu0  ;;  %v434_v19 = vpop.f32.mrf.mxu1 }
 0x121   : > { %v854_v20 = vpop.f32.mrf.mxu0  ;;  %v862_v21 = vpop.f32.mrf.mxu1 }
 0x122   : > { %v780_v22 = vpack.c.bf16 %v854_v20, %v853_v16  ;;  %v800_v23 = vpack.c.bf16 %v862_v21, %v861_v17 }
 0x123   : > { %v405_v24 = vpop.f32.mrf.mxu0  ;;  %v437_v25 = vpop.f32.mrf.mxu1 }
 0x124   : > { %812 = vst [vmem:[%s199_s17 + $0x8] sm:$0xff] %v780_v22   ;;  %816 = vst [vmem:[%s199_s17 + $0x28] sm:$0xff] %v800_v23   ;;  %v775_v26 = vpack.c.bf16 %v405_v24, %v402_v18  ;;  %v795_v27 = vpack.c.bf16 %v437_v25, %v434_v19 }
 0x125   : > { %v857_v28 = vpop.f32.mrf.mxu0  ;;  %v865_v29 = vpop.f32.mrf.mxu1 }
 0x126   : > { %776 = vst [vmem:[%s199_s17] sm:$0xff] %v775_v26   ;;  %815 = vst [vmem:[%s199_s17 + $0x20] sm:$0xff] %v795_v27  }
 0x127   : > { %v418_v30 = vpop.f32.mrf.mxu0  ;;  %v450_v31 = vpop.f32.mrf.mxu1 }
 0x129   : > { %v858_v32 = vpop.f32.mrf.mxu0  ;;  %v866_v33 = vpop.f32.mrf.mxu1 }
 0x12a   : > { %v790_v34 = vpack.c.bf16 %v858_v32, %v857_v28  ;;  %v810_v35 = vpack.c.bf16 %v866_v33, %v865_v29 }
 0x12b   : > { %v421_v36 = vpop.f32.mrf.mxu0  ;;  %v453_v37 = vpop.f32.mrf.mxu1 }
 0x12c   : > { %814 = vst [vmem:[%s199_s17 + $0x18] sm:$0xff] %v790_v34   ;;  %818 = vst [vmem:[%s199_s17 + $0x38] sm:$0xff] %v810_v35   ;;  %v785_v38 = vpack.c.bf16 %v421_v36, %v418_v30  ;;  %v805_v39 = vpack.c.bf16 %v453_v37, %v450_v31 }
 0x12e   : > { %813 = vst [vmem:[%s199_s17 + $0x10] sm:$0xff] %v785_v38   ;;  %817 = vst [vmem:[%s199_s17 + $0x30] sm:$0xff] %v805_v39  }
 0x12f   : > { %1043 = shalt.err (!%p1040_p5)
}
 0x130   : > { %s1044_s6 = scalar_lea.hbm %s1291_s24, 1024  ;;  %s1048_s4 = scalar_lea.hbm %s1341_s2, 2048 }
 0x131   : > { %p1045_p7 = scmp.ne.s32.totalorder %s1291_s24, %s1044_s6  ;;  %p1049_p9 = scmp.lt.s32.totalorder %s1291_s24, %s1341_s2 }
 0x132   : > { %p1050_p11 = scmp.lt.s32.totalorder %s1048_s4, %s1044_s6 }
 0x133   : > { %p1046_p4 = pnand %p1045_p7, %p1228_p13 }
 0x134   : > { %p1051_p10 = por %p1050_p11, %p1049_p9 }
 0x135   : > { %p1047_p6 = pneg %p1046_p4 }
 0x137   : > { %p1052_p1 = pnand %p1051_p10, %p1047_p6 }
 0x139   : > { %1055 = shalt.err (!%p1052_p1)
}
 0x13a   : > { %s1121_s22 = smov 64   ;;  %s1122_s17 = smov 4  }
 0x13b   : > { %889 = dma.vmem_to_hbm [thread:$0]  (%p1228_p13), %s1286_s19, 1024, %s1291_s24, %s597_s12, %s1121_s22, %s1121_s22, %s1122_s17  }
 0x13c PF: > { %s625_s21 = sand.u32 1, %s1094_s9   ;;  %p1355_p8 = scmp.ne.s32.totalorder %s1347_s20, 0 }
 0x13d   : > { %p1356_p12 = scmp.ge.s32.totalorder %s1114_s14, 2  ;;  %s626_s28 = scalar_lea.sflag [#allocation5], %s625_s21 }
 0x13f   : > { %p900_p0 = pnand %p1356_p12, %p1355_p8 }
 0x141   : > { %p901_p2 = pneg %p900_p0 }
 0x143   : > { %1089 = dma.done.wait (%p901_p2), %s626_s28, 1024  }
 0x144   : > { %1091 = vsyncadd (%p901_p2), %s626_s28, 4294966272  ;;  %s19_s14 = sadd.s32 1, %s1114_s14   ;;  %s1357_s9 = smov %s1098_s10 }
 0x145   : > { %p16_p3 = scmp.ge.s32.totalorder %s19_s14, 4   ;;  %s1358_s10 = smov %s1102_s11 }
 0x146   : > { %s1359_s11 = smov %s1237_s15  ;;  %s1360_s12 = smov %s1110_s13 }
 0x147   : > { %s1361_s13 = smov %s1363_s25  ;;  %18 = sbr.rel (!%p16_p3) target bundleno = 7 (0x7), region = 86 }
 0x14c   :  { %631 = vsyncpa [#allocation4], 1 }
 0x14d   :  { %633 = vsyncpa [#allocation4 + $0x1], 1 }
 0x14e   :  { %634 = vsyncpa [#allocation7], 1 }
 0x14f   :  { %635 = vsyncpa [#allocation5], 1 }
 0x150   :  { %637 = vsyncpa [#allocation5 + $0x1], 1 }

</bundles_post_ra>
